<compile_context>
chip_gen: v6e
topology: v6e:2x2x1
jax: 0.10.0
libtpu: 0.0.40
codegen_flags: <defaults>
</compile_context>

<pallas_src>
import jax
import jax.numpy as jnp
from jax.experimental import pallas as pl
from jax.experimental.pallas import tpu as pltpu


def _round_up(x, m):
    return ((x + m - 1) // m) * m


def _gaussian_kernel(val_ref, mean_ref, std_ref, o_ref):
    # val_ref: [T, 1]; mean_ref/std_ref: [1, K]; o_ref: [T, K]
    val = val_ref[...]                              # [T, 1]
    mean = mean_ref[...]                            # [1, K]
    std = jnp.abs(std_ref[...]) + 1e-5              # matches .abs() + 1e-5

    # Hoisted per-[1,K]-row work: one exact divide on 128 elems per grid step,
    # instead of two divides per output element.
    a = (2.0 * 3.14159) ** 0.5                      # matches torch.jit gaussian()
    inv_std = 1.0 / std                             # [1, K]
    coef = inv_std * (1.0 / a)                      # [1, K]

    diff = (val - mean) * inv_std                   # broadcast -> [T, K]
    o_ref[...] = jnp.exp(-0.5 * (diff * diff)) * coef


def gaussian_layer(x, edge_type, means, stds, mul_w, bias_w, *, rows_tile=2048):
    """x: [B, N, N] float, edge_type: [B, N, N] int -> [B, N, N, K] float32."""
    B, N, M = x.shape
    K = means.shape[-1]

    # Embedding lookups (glue, plain JAX gather), matching
    #   mul = self.mul(edge_type).type_as(x); bias = self.bias(edge_type).type_as(x)
    mul = mul_w[edge_type, 0].astype(x.dtype)       # [B, N, N]
    bias = bias_w[edge_type, 0].astype(x.dtype)     # [B, N, N]

    # Affine in x's dtype (matches mul * x.unsqueeze(-1) + bias), then .float().
    val = (mul * x + bias).astype(jnp.float32)      # [B, N, N]

    rows = B * N * M
    # Effective tile: big enough to amortize ~0.35 us/step grid overhead, but
    # never larger than the (8-rounded) problem; pad rows to a tile multiple.
    rt = _round_up(min(rows_tile, _round_up(rows, 8)), 8)
    rows_p = _round_up(rows, rt)

    valf = val.reshape(rows, 1)
    if rows_p != rows:
        valf = jnp.pad(valf, ((0, rows_p - rows), (0, 0)))

    mean2 = means.reshape(1, K).astype(jnp.float32)
    std2 = stds.reshape(1, K).astype(jnp.float32)

    out = pl.pallas_call(
        _gaussian_kernel,
        out_shape=jax.ShapeDtypeStruct((rows_p, K), jnp.float32),
        grid=(rows_p // rt,),
        in_specs=[
            pl.BlockSpec((rt, 1), lambda i: (i, 0)),
            pl.BlockSpec((1, K), lambda i: (0, 0)),
            pl.BlockSpec((1, K), lambda i: (0, 0)),
        ],
        out_specs=pl.BlockSpec((rt, K), lambda i: (i, 0)),
        compiler_params=pltpu.CompilerParams(
            dimension_semantics=("parallel",)),
    )(valf, mean2, std2)

    # Output dtype is type_as(self.means.weight) == float32.
    return out[:rows].reshape(B, N, M, K)


def _reference(x, edge_type, means, stds, mul_w, bias_w):
    mul = mul_w[edge_type].astype(x.dtype)          # [B, N, N, 1]
    bias = bias_w[edge_type].astype(x.dtype)        # [B, N, N, 1]
    v = mul * x[..., None] + bias                   # [B, N, N, 1]
    mean = means.reshape(-1).astype(jnp.float32)
    std = jnp.abs(stds.reshape(-1).astype(jnp.float32)) + 1e-5
    a = (2.0 * 3.14159) ** 0.5
    v = v.astype(jnp.float32)
    return jnp.exp(-0.5 * ((v - mean) / std) ** 2) / (a * std)


if __name__ == "__main__":
    K = 128
    edge_types = 1024

    key = jax.random.PRNGKey(0)
    k_means, k_stds, k_x, k_et, k_x2, k_et2 = jax.random.split(key, 6)

    # Deterministic parameter init matching nn.init in the module's __init__.
    means = jax.random.uniform(k_means, (1, K), jnp.float32, 0.0, 3.0)   # U(0,3)
    stds = jax.random.uniform(k_stds, (1, K), jnp.float32, 0.0, 3.0)     # U(0,3)
    mul_w = jnp.ones((edge_types, 1), jnp.float32)                        # const 1
    bias_w = jnp.zeros((edge_types, 1), jnp.float32)                      # const 0

    # Case 1: B=2, N=8 -> rows = 128 (divides the tile evenly).
    B, N = 2, 8
    x = jax.random.uniform(k_x, (B, N, N), jnp.float32, 0.0, 5.0)
    edge_type = jax.random.randint(k_et, (B, N, N), 0, edge_types, jnp.int32)

    out = gaussian_layer(x, edge_type, means, stds, mul_w, bias_w)
    out = jax.block_until_ready(out)
    ref = _reference(x, edge_type, means, stds, mul_w, bias_w)
    assert out.shape == (B, N, N, K) and out.dtype == jnp.float32
    assert jnp.allclose(out, ref, atol=1e-5, rtol=1e-5)

    # Case 2: odd size -> rows = 81, exercises the row-padding path.
    B2, N2 = 1, 9
    x2 = jax.random.uniform(k_x2, (B2, N2, N2), jnp.float32, 0.0, 5.0)
    edge_type2 = jax.random.randint(k_et2, (B2, N2, N2), 0, edge_types, jnp.int32)

    out2 = gaussian_layer(x2, edge_type2, means, stds, mul_w, bias_w)
    out2 = jax.block_until_ready(out2)
    ref2 = _reference(x2, edge_type2, means, stds, mul_w, bias_w)
    assert out2.shape == (B2, N2, N2, K) and out2.dtype == jnp.float32
    assert jnp.allclose(out2, ref2, atol=1e-5, rtol=1e-5)

    print("KERNEL_OK")
</pallas_src>

<mosaic_0001>
module attributes {stable_mosaic.version = 11 : i64} {
  func.func @_gaussian_kernel(%arg0: i32, %arg1: memref<128x1xf32, #tpu.memory_space<vmem>>, %arg2: memref<1x128xf32, #tpu.memory_space<vmem>>, %arg3: memref<1x128xf32, #tpu.memory_space<vmem>>, %arg4: memref<128x128xf32, #tpu.memory_space<vmem>>) attributes {dimension_semantics = [#tpu.dimension_semantics<parallel>], iteration_bounds = array<i64: 1>, scalar_prefetch = 0 : i64, scratch_operands = 0 : i64, tpu.core_type = #tpu.core_type<tc>, window_params = [{transform_indices = @transform_0, window_bounds = array<i64: 128, 1>}, {pipeline_mode = #tpu.pipeline_mode<synchronous>, transform_indices = @transform_1, window_bounds = array<i64: 1, 128>}, {pipeline_mode = #tpu.pipeline_mode<synchronous>, transform_indices = @transform_2, window_bounds = array<i64: 1, 128>}, {transform_indices = @transform_3, window_bounds = array<i64: 128, 128>}]} {
    %c0 = arith.constant 0 : index
    %c0_0 = arith.constant 0 : index
    %0 = vector.load %arg1[%c0, %c0_0] : memref<128x1xf32, #tpu.memory_space<vmem>>, vector<128x1xf32>
    %c0_1 = arith.constant 0 : index
    %c0_2 = arith.constant 0 : index
    %1 = vector.load %arg2[%c0_1, %c0_2] : memref<1x128xf32, #tpu.memory_space<vmem>>, vector<1x128xf32>
    %c0_3 = arith.constant 0 : index
    %c0_4 = arith.constant 0 : index
    %2 = vector.load %arg3[%c0_3, %c0_4] : memref<1x128xf32, #tpu.memory_space<vmem>>, vector<1x128xf32>
    %3 = math.absf %2 : vector<1x128xf32>
    %cst = arith.constant 9.99999974E-6 : f32
    %4 = vector.broadcast %cst : f32 to vector<1x128xf32>
    %5 = arith.addf %3, %4 : vector<1x128xf32>
    %cst_5 = arith.constant 1.000000e+00 : f32
    %6 = vector.broadcast %cst_5 : f32 to vector<1x128xf32>
    %7 = arith.divf %6, %5 : vector<1x128xf32>
    %cst_6 = arith.constant 0.398942441 : f32
    %8 = vector.broadcast %cst_6 : f32 to vector<1x128xf32>
    %9 = arith.mulf %7, %8 : vector<1x128xf32>
    %10 = vector.broadcast %0 : vector<128x1xf32> to vector<128x128xf32>
    %11 = vector.broadcast %1 : vector<1x128xf32> to vector<128x128xf32>
    %12 = arith.subf %10, %11 : vector<128x128xf32>
    %13 = vector.broadcast %7 : vector<1x128xf32> to vector<128x128xf32>
    %14 = arith.mulf %12, %13 : vector<128x128xf32>
    %15 = arith.mulf %14, %14 : vector<128x128xf32>
    %cst_7 = arith.constant -5.000000e-01 : f32
    %16 = vector.broadcast %cst_7 : f32 to vector<128x128xf32>
    %17 = arith.mulf %16, %15 : vector<128x128xf32>
    %18 = math.exp %17 : vector<128x128xf32>
    %19 = vector.broadcast %9 : vector<1x128xf32> to vector<128x128xf32>
    %20 = arith.mulf %18, %19 : vector<128x128xf32>
    %c0_8 = arith.constant 0 : index
    %c0_9 = arith.constant 0 : index
    %21 = vector.load %arg4[%c0_8, %c0_9] : memref<128x128xf32, #tpu.memory_space<vmem>>, vector<128x128xf32>
    tpu.vector_store %arg4[%c0_8, %c0_9], %20 {strides = array<i32>} : memref<128x128xf32, #tpu.memory_space<vmem>>, vector<128x128xf32>,
    return
  }
  func.func @transform_0(%arg0: i32) -> (i32, i32) {
    %c0_i32 = arith.constant 0 : i32
    %c0_i32_0 = arith.constant 0 : i32
    return %arg0, %c0_i32 : i32, i32
  }
  func.func @transform_1(%arg0: i32) -> (i32, i32) {
    %c0_i32 = arith.constant 0 : i32
    %c0_i32_0 = arith.constant 0 : i32
    %c0_i32_1 = arith.constant 0 : i32
    return %c0_i32, %c0_i32_0 : i32, i32
  }
  func.func @transform_2(%arg0: i32) -> (i32, i32) {
    %c0_i32 = arith.constant 0 : i32
    %c0_i32_0 = arith.constant 0 : i32
    %c0_i32_1 = arith.constant 0 : i32
    return %c0_i32, %c0_i32_0 : i32, i32
  }
  func.func @transform_3(%arg0: i32) -> (i32, i32) {
    %c0_i32 = arith.constant 0 : i32
    %c0_i32_0 = arith.constant 0 : i32
    return %arg0, %c0_i32 : i32, i32
  }
}

</mosaic_0001>

<bundles_post_ra>
// kernel: tpu_custom_call.1
= control target key start
LH: loop header
LB: loop body
LE: loop exit
PB: predicated region body
PF: predicated region fallthrough
CT: control target
= control target key end

     0   :  { %v343_v2 = vmov 0   ;;  %s481_s0 = inlined_call_operand.vmem [shape: f32[128,1], index: 0, kind: input, shape index: {}]   ;;  %s482_s1 = inlined_call_operand.vmem [shape: f32[1,128], index: 1, kind: input, shape index: {}]   ;;  %s483_s2 = inlined_call_operand.vmem [shape: f32[1,128], index: 2, kind: input, shape index: {}]   ;;  %s484_s3 = inlined_call_operand.hbm [shape: f32[128,128], index: 3, kind: output, shape index: {}]  }
   0x1   :  { %v17_v0 = vld [vmem:[%s481_s0 + $0x10] sm:$0xff]  ;;  %v15_v1 = vld [vmem:[%s481_s0] sm:$0xff]  ;;  %286 = vset.pattern.permute.xlu1 %v343_v2  ;;  %285 = vset.pattern.permute.xlu0 %v343_v2  ;;  %v18_v3 = vld [vmem:[%s481_s0 + $0x18] sm:$0xff] }
   0x2   :  { %50 = vperm.xlu1 %286, %v17_v0   ;;  %40 = vperm.xlu0 %285, %v15_v1   ;;  %v16_v4 = vld [vmem:[%s481_s0 + $0x8] sm:$0xff] }
   0x6   :  { %55 = vperm.xlu1 %286, %v18_v3   ;;  %45 = vperm.xlu0 %285, %v16_v4  }
   0x7   :  { %8 = vsyncpa [#allocation3], 0  ;;  %v20_v5 = vld [vmem:[%s481_s0 + $0x28] sm:$0xff]  ;;  %v19_v6 = vld [vmem:[%s481_s0 + $0x20] sm:$0xff]  ;;  %v141_v20 = vlaneseq }
   0x8   :  { %v22_v7 = vld [vmem:[%s481_s0 + $0x38] sm:$0xff]  ;;  %v21_v8 = vld [vmem:[%s481_s0 + $0x30] sm:$0xff]  ;;  %v24_v9 = vld [vmem:[%s481_s0 + $0x48] sm:$0xff] }
   0x9   :  { %v23_v10 = vld [vmem:[%s481_s0 + $0x40] sm:$0xff]  ;;  %v26_v11 = vld [vmem:[%s481_s0 + $0x58] sm:$0xff]  ;;  %v25_v12 = vld [vmem:[%s481_s0 + $0x50] sm:$0xff]  ;;  %v418_v21 = vshrl.u32 %v141_v20, 7 }
   0xa   :  { %65 = vperm.xlu1 %286, %v20_v5   ;;  %60 = vperm.xlu0 %285, %v19_v6   ;;  %v28_v13 = vld [vmem:[%s481_s0 + $0x68] sm:$0xff]  ;;  %v27_v14 = vld [vmem:[%s481_s0 + $0x60] sm:$0xff]  ;;  %v30_v15 = vld [vmem:[%s481_s0 + $0x78] sm:$0xff] }
   0xb   :  { %v29_v16 = vld [vmem:[%s481_s0 + $0x70] sm:$0xff]  ;;  %v32_v17 = vld [vmem:[%s483_s2] sm:$0x1]  ;;  %v143_v22 = vsub.s32 0, %v418_v21  ;;  %s344_s0 = smov [#allocation2]  }
   0xc   :  { %v33_v18 = vand.u32 2147483647, %v32_v17  ;;  %v424_v24 = vld [vmem:[%s482_s1] ss:$0 sm:$0xff]  ;;  %s269_s1 = sshll.u32 %s344_s0, 4  ;;  %s270_s1 = int_to_ptr.vmem [resolvable:$true] %s269_s1 }
   0xd   :  { %s321_s2 = scalar_lea.vmem %s270_s1, 2048  ;;  %p326_p1 = scmp.lt.s32.totalorder %s270_s1, %s270_s1 }
   0xe   :  { %75 = vperm.xlu1 %286, %v22_v7   ;;  %70 = vperm.xlu0 %285, %v21_v8   ;;  %v34_v19 = vadd.f32 1e-05, %v33_v18  ;;  %p322_p0 = scmp.ne.s32.totalorder %s270_s1, %s321_s2  ;;  %p327_p2 = scmp.lt.s32.totalorder %s321_s2, %s321_s2 }
  0x10   :  { %287 = vrcp.f32 %v34_v19  ;;  %p328_p3 = por %p327_p2, %p326_p1 }
  0x12   :  { %85 = vperm.xlu1 %286, %v24_v9   ;;  %80 = vperm.xlu0 %285, %v23_v10   ;;  %p329_p4 = pnand %p328_p3, %p322_p0 }
  0x16   :  { %95 = vperm.xlu1 %286, %v26_v11   ;;  %90 = vperm.xlu0 %285, %v25_v12  }
  0x1a   :  { %105 = vperm.xlu1 %286, %v28_v13   ;;  %100 = vperm.xlu0 %285, %v27_v14  }
  0x1d   :  { %v288_v23 = vpop.eup %287 }
  0x1e   :  { %115 = vperm.xlu1 %286, %v30_v15   ;;  %110 = vperm.xlu0 %285, %v29_v16   ;;  %v426_v25 = vrot.slane %v288_v23, %v143_v22  ;;  %v37_v0 = vmul.f32 0.39894244, %v288_v23 }
  0x20   :  { %v448_v15 = vrot.slane %v37_v0, %v143_v22 }
  0x7d   :  { %v51_v26 = vpop.permute.xlu1 %50  ;;  %v41_v27 = vpop.permute.xlu0 %40 }
  0x7e   :  { %v126_v28 = vsub.f32 %v51_v26, %v424_v24  ;;  %v124_v29 = vsub.f32 %v41_v27, %v424_v24 }
  0x80   :  { %v148_v30 = vmul.f32 %v426_v25, %v126_v28  ;;  %v146_v31 = vmul.f32 %v426_v25, %v124_v29 }
  0x81   :  { %v56_v32 = vpop.permute.xlu1 %55  ;;  %v46_v33 = vpop.permute.xlu0 %45 }
  0x82   :  { %v164_v34 = vmul.f32 %v148_v30, %v148_v30  ;;  %v162_v35 = vmul.f32 %v146_v31, %v146_v31  ;;  %v127_v36 = vsub.f32 %v56_v32, %v424_v24  ;;  %v125_v37 = vsub.f32 %v46_v33, %v424_v24 }
  0x84   :  { %v180_v38 = vmul.f32 -0.5, %v164_v34  ;;  %v178_v39 = vmul.f32 -0.5, %v162_v35  ;;  %v149_v40 = vmul.f32 %v426_v25, %v127_v36  ;;  %v147_v41 = vmul.f32 %v426_v25, %v125_v37 }
  0x85   :  { %v66_v42 = vpop.permute.xlu1 %65  ;;  %v61_v43 = vpop.permute.xlu0 %60 }
  0x86   :  { %v198_v44 = vmul.f32 1.442695, %v180_v38  ;;  %v194_v45 = vmul.f32 1.442695, %v178_v39  ;;  %v165_v46 = vmul.f32 %v149_v40, %v149_v40  ;;  %v163_v47 = vmul.f32 %v147_v41, %v147_v41 }
  0x87   :  { %v129_v48 = vsub.f32 %v66_v42, %v424_v24  ;;  %v128_v49 = vsub.f32 %v61_v43, %v424_v24 }
  0x88   :  { %289 = vpow2.f32 %v198_v44  ;;  %v181_v50 = vmul.f32 -0.5, %v165_v46  ;;  %v179_v51 = vmul.f32 -0.5, %v163_v47 }
  0x89   :  { %291 = vpow2.f32 %v194_v45  ;;  %v151_v52 = vmul.f32 %v426_v25, %v129_v48  ;;  %v150_v53 = vmul.f32 %v426_v25, %v128_v49  ;;  %v76_v54 = vpop.permute.xlu1 %75  ;;  %v71_v55 = vpop.permute.xlu0 %70 }
  0x8a   :  { %v200_v56 = vmul.f32 1.442695, %v181_v50  ;;  %v196_v57 = vmul.f32 1.442695, %v179_v51  ;;  %v131_v58 = vsub.f32 %v76_v54, %v424_v24  ;;  %v130_v59 = vsub.f32 %v71_v55, %v424_v24 }
  0x8b   :  { %v167_v60 = vmul.f32 %v151_v52, %v151_v52  ;;  %v166_v61 = vmul.f32 %v150_v53, %v150_v53 }
  0x8c   :  { %293 = vpow2.f32 %v200_v56  ;;  %v153_v62 = vmul.f32 %v426_v25, %v131_v58  ;;  %v152_v63 = vmul.f32 %v426_v25, %v130_v59 }
  0x8d   :  { %295 = vpow2.f32 %v196_v57  ;;  %v183_v1 = vmul.f32 -0.5, %v167_v60  ;;  %v182_v2 = vmul.f32 -0.5, %v166_v61  ;;  %v86_v3 = vpop.permute.xlu1 %85  ;;  %v81_v4 = vpop.permute.xlu0 %80 }
  0x8e   :  { %v169_v5 = vmul.f32 %v153_v62, %v153_v62  ;;  %v168_v6 = vmul.f32 %v152_v63, %v152_v63  ;;  %v133_v7 = vsub.f32 %v86_v3, %v424_v24  ;;  %v132_v8 = vsub.f32 %v81_v4, %v424_v24 }
  0x8f   :  { %v204_v9 = vmul.f32 1.442695, %v183_v1  ;;  %v202_v10 = vmul.f32 1.442695, %v182_v2 }
  0x90   :  { %v185_v11 = vmul.f32 -0.5, %v169_v5  ;;  %v184_v12 = vmul.f32 -0.5, %v168_v6  ;;  %v155_v13 = vmul.f32 %v426_v25, %v133_v7  ;;  %v154_v14 = vmul.f32 %v426_v25, %v132_v8 }
  0x91   :  { %297 = vpow2.f32 %v204_v9  ;;  %v96_v16 = vpop.permute.xlu1 %95  ;;  %v91_v17 = vpop.permute.xlu0 %90 }
  0x92   :  { %299 = vpow2.f32 %v202_v10  ;;  %v208_v18 = vmul.f32 1.442695, %v185_v11  ;;  %v206_v19 = vmul.f32 1.442695, %v184_v12  ;;  %v171_v20 = vmul.f32 %v155_v13, %v155_v13 }
  0x93   :  { %v170_v21 = vmul.f32 %v154_v14, %v154_v14  ;;  %v135_v23 = vsub.f32 %v96_v16, %v424_v24  ;;  %v134_v26 = vsub.f32 %v91_v17, %v424_v24 }
  0x94   :  { %301 = vpow2.f32 %v208_v18  ;;  %v187_v27 = vmul.f32 -0.5, %v171_v20 }
  0x95   :  { %v290_v28 = vpop.eup %289  ;;  %303 = vpow2.f32 %v206_v19  ;;  %v186_v29 = vmul.f32 -0.5, %v170_v21  ;;  %v157_v22 = vmul.f32 %v426_v25, %v135_v23  ;;  %v156_v30 = vmul.f32 %v426_v25, %v134_v26  ;;  %v106_v31 = vpop.permute.xlu1 %105 }
  0x96   :  { %v101_v32 = vpop.permute.xlu0 %100  ;;  %v292_v33 = vpop.eup %291  ;;  %v234_v34 = vmul.f32 %v290_v28, %v448_v15  ;;  %v212_v35 = vmul.f32 1.442695, %v187_v27  ;;  %v137_v36 = vsub.f32 %v106_v31, %v424_v24 }
  0x97   :  { %v136_v37 = vsub.f32 %v101_v32, %v424_v24  ;;  %v232_v38 = vmul.f32 %v292_v33, %v448_v15  ;;  %v210_v39 = vmul.f32 1.442695, %v186_v29  ;;  %v173_v40 = vmul.f32 %v157_v22, %v157_v22 }
  0x98   :  { %v172_v41 = vmul.f32 %v156_v30, %v156_v30  ;;  %250 = vst [vmem:[#allocation2 + $0x10] sm:$0xff] %v234_v34  ;;  %305 = vpow2.f32 %v212_v35  ;;  %v159_v42 = vmul.f32 %v426_v25, %v137_v36 }
  0x99   :  { %v158_v43 = vmul.f32 %v426_v25, %v136_v37  ;;  %v294_v44 = vpop.eup %293  ;;  %248 = vst [vmem:[#allocation2] sm:$0xff] %v232_v38  ;;  %307 = vpow2.f32 %v210_v39  ;;  %v189_v45 = vmul.f32 -0.5, %v173_v40  ;;  %v116_v47 = vpop.permute.xlu1 %115 }
  0x9a   :  { %v188_v46 = vmul.f32 -0.5, %v172_v41  ;;  %v111_v48 = vpop.permute.xlu0 %110  ;;  %v296_v49 = vpop.eup %295  ;;  %v235_v50 = vmul.f32 %v294_v44, %v448_v15  ;;  %v175_v51 = vmul.f32 %v159_v42, %v159_v42  ;;  %v139_v53 = vsub.f32 %v116_v47, %v424_v24 }
  0x9b   :  { %v174_v52 = vmul.f32 %v158_v43, %v158_v43  ;;  %v233_v54 = vmul.f32 %v296_v49, %v448_v15  ;;  %v216_v55 = vmul.f32 1.442695, %v189_v45  ;;  %v138_v57 = vsub.f32 %v111_v48, %v424_v24 }
  0x9c   :  { %v214_v56 = vmul.f32 1.442695, %v188_v46  ;;  %251 = vst [vmem:[#allocation2 + $0x18] sm:$0xff] %v235_v50  ;;  %v191_v58 = vmul.f32 -0.5, %v175_v51  ;;  %v161_v60 = vmul.f32 %v426_v25, %v139_v53 }
  0x9d   :  { %v190_v59 = vmul.f32 -0.5, %v174_v52  ;;  %249 = vst [vmem:[#allocation2 + $0x8] sm:$0xff] %v233_v54  ;;  %309 = vpow2.f32 %v216_v55  ;;  %v160_v61 = vmul.f32 %v426_v25, %v138_v57 }
  0x9e   :  { %v298_v62 = vpop.eup %297  ;;  %311 = vpow2.f32 %v214_v56  ;;  %v220_v63 = vmul.f32 1.442695, %v191_v58  ;;  %v177_v1 = vmul.f32 %v161_v60, %v161_v60 }
  0x9f   :  { %v218_v0 = vmul.f32 1.442695, %v190_v59  ;;  %v300_v2 = vpop.eup %299  ;;  %v237_v3 = vmul.f32 %v298_v62, %v448_v15  ;;  %v176_v4 = vmul.f32 %v160_v61, %v160_v61 }
  0xa0   :  { %v236_v24 = vmul.f32 %v300_v2, %v448_v15  ;;  %313 = vpow2.f32 %v220_v63  ;;  %v193_v5 = vmul.f32 -0.5, %v177_v1 }
  0xa1   :  { %v302_v6 = vpop.eup %301  ;;  %253 = vst [vmem:[#allocation2 + $0x28] sm:$0xff] %v237_v3  ;;  %315 = vpow2.f32 %v218_v0  ;;  %v192_v7 = vmul.f32 -0.5, %v176_v4 }
  0xa2   :  { %v304_v8 = vpop.eup %303  ;;  %252 = vst [vmem:[#allocation2 + $0x20] sm:$0xff] %v236_v24  ;;  %v239_v25 = vmul.f32 %v302_v6, %v448_v15  ;;  %v224_v9 = vmul.f32 1.442695, %v193_v5 }
  0xa3   :  { %v238_v10 = vmul.f32 %v304_v8, %v448_v15  ;;  %v222_v11 = vmul.f32 1.442695, %v192_v7 }
  0xa4   :  { %255 = vst [vmem:[#allocation2 + $0x38] sm:$0xff] %v239_v25  ;;  %317 = vpow2.f32 %v224_v9 }
  0xa5   :  { %v306_v12 = vpop.eup %305  ;;  %254 = vst [vmem:[#allocation2 + $0x30] sm:$0xff] %v238_v10  ;;  %319 = vpow2.f32 %v222_v11 }
  0xa6   :  { %v308_v13 = vpop.eup %307  ;;  %v241_v14 = vmul.f32 %v306_v12, %v448_v15 }
  0xa7   :  { %v240_v16 = vmul.f32 %v308_v13, %v448_v15 }
  0xa8   :  { %257 = vst [vmem:[#allocation2 + $0x48] sm:$0xff] %v241_v14 }
  0xa9   :  { %256 = vst [vmem:[#allocation2 + $0x40] sm:$0xff] %v240_v16 }
  0xaa   :  { %v310_v17 = vpop.eup %309 }
  0xab   :  { %v312_v18 = vpop.eup %311  ;;  %v243_v19 = vmul.f32 %v310_v17, %v448_v15 }
  0xac   :  { %v242_v20 = vmul.f32 %v312_v18, %v448_v15 }
  0xad   :  { %v314_v21 = vpop.eup %313  ;;  %259 = vst [vmem:[#allocation2 + $0x58] sm:$0xff] %v243_v19 }
  0xae   :  { %v316_v23 = vpop.eup %315  ;;  %258 = vst [vmem:[#allocation2 + $0x50] sm:$0xff] %v242_v20  ;;  %v245_v26 = vmul.f32 %v314_v21, %v448_v15 }
  0xaf   :  { %v244_v27 = vmul.f32 %v316_v23, %v448_v15 }
  0xb0   :  { %261 = vst [vmem:[#allocation2 + $0x68] sm:$0xff] %v245_v26 }
  0xb1   :  { %v318_v28 = vpop.eup %317  ;;  %260 = vst [vmem:[#allocation2 + $0x60] sm:$0xff] %v244_v27 }
  0xb2   :  { %v320_v29 = vpop.eup %319  ;;  %v247_v22 = vmul.f32 %v318_v28, %v448_v15 }
  0xb3   :  { %v246_v30 = vmul.f32 %v320_v29, %v448_v15 }
  0xb4   :  { %263 = vst [vmem:[#allocation2 + $0x78] sm:$0xff] %v247_v22 }
  0xb5   :  { %262 = vst [vmem:[#allocation2 + $0x70] sm:$0xff] %v246_v30 }
  0xb6   :  { %332 = shalt.err (!%p329_p4)
}
  0xb7   :  { %s345_s21 = smov 128   ;;  %s346_s22 = smov 8  }
  0xb8   :  { %275 = dma.vmem_to_hbm [thread:$0]  %s270_s1, 2048, %s484_s3, [#allocation3], %s345_s21, %s345_s21, %s346_s22  }
  0xb9   :  { %341 = dma.done.wait [#allocation3], 2048  }
  0xba   :  { %342 = vsyncadd [#allocation3], 4294965248 }
  0xbb   :  { %279 = vsyncpa [#allocation3], 1 }

</bundles_post_ra>
